<compile_context>
chip_gen: v5e
topology: v5e:2x2
jax: 0.10.0
libtpu: 0.0.40
codegen_flags: <defaults>
</compile_context>

<pallas_src>
import math

import jax
import jax.numpy as jnp
from jax.experimental import pallas as pl
from jax.experimental.pallas import tpu as pltpu


def _round_up(n, m):
    return ((n + m - 1) // m) * m


def _attention_kernel(x_ref, w_ref, b_ref, o_ref):
    # x_ref: (TB, S, D) tile of batch rows (f32 or bf16; upcast once below)
    # w_ref: (S, D)     attention weights (atten_w[..., 0]); resident across grid steps
    # b_ref: (S, 1)     attention bias    (atten_bias[..., 0]); f32, resident
    # o_ref: (TB, D)    weighted-sum output for this batch tile
    x = x_ref[...].astype(jnp.float32)
    w = w_ref[...].astype(jnp.float32)
    b = b_ref[...]                                               # (S, 1) f32

    # scores[b, s] = tanh( sum_d x[b, s, d] * w[s, d] + bias[s] )
    # VPU multiply + lane (D) reduce on XLU + tanh on EUP; stays in the natural layout.
    s = jnp.sum(x * w[None, :, :], axis=-1, keepdims=True)       # (TB, S, 1)
    scores = jnp.tanh(s + b[None, :, :])                         # (TB, S, 1)

    # out[b, d] = sum_s scores[b, s] * x[b, s, d]
    # VPU multiply + sublane (S) reduce — no M=1 MXU matmuls, no transposes.
    # TODO(synk): for v7x with D << 128 a lane-dense (tb, S*D) reformulation would cut
    # the ~128/D wasted VPU/XLU lanes; DMA-bound on v5e/v6e so not done here.
    o_ref[...] = jnp.sum(scores * x, axis=1).astype(o_ref.dtype)


def attention_forward(lstm_input, atten_w, atten_bias, *, block_b=None,
                      stream_dtype=None):
    """Pallas TPU forward for the Attention module.

    lstm_input: (B, S, D) float32
    atten_w:    (S, D, 1) float32
    atten_bias: (S, 1, 1) float32
    block_b:     optional hard cap on the batch tile (rows per grid step)
    stream_dtype: e.g. jnp.bfloat16 to stream x/w at half the HBM traffic
                  (compute/accumulation stays f32; output dtype unchanged).
                  The win assumes x already lives (or is produced) in that dtype.
    returns:    (B, D) in lstm_input.dtype
    """
    B, S, D = lstm_input.shape
    out_dtype = lstm_input.dtype

    x = lstm_input if stream_dtype is None else lstm_input.astype(stream_dtype)
    w2d = atten_w[..., 0]                                        # (S, D)
    if stream_dtype is not None:
        w2d = w2d.astype(stream_dtype)
    b2d = atten_bias[..., 0].astype(jnp.float32)                 # (S, 1)

    itemsize = jnp.dtype(x.dtype).itemsize
    out_itemsize = jnp.dtype(out_dtype).itemsize

    # ---- per-generation scoped-VMEM limit (explicit; defaults are 16/32 MiB) ----
    try:
        info = pltpu.get_tpu_info()
        phys_vmem = int(getattr(info, "vmem_capacity_bytes", 64 * 1024 * 1024))
    except Exception:  # detection failure -> conservative (v7x per-TC) assumption
        phys_vmem = 64 * 1024 * 1024
    vmem_limit = min((phys_vmem * 3) // 4, 96 * 1024 * 1024)     # 96 MiB on 128-MiB parts, 48 MiB on v7x

    # ---- padding-aware VMEM footprint per batch row of the tile ----
    # VMEM blocks pad the last dim to 128 lanes and the second-to-last dim to the
    # dtype sublane multiple (f32: 8, bf16: 16).
    sublane = max(8, 32 // itemsize)
    x_row_pad = _round_up(S, sublane) * _round_up(D, 128) * itemsize
    o_row_pad = _round_up(D, 128) * out_itemsize
    # headroom for f32 elementwise temporaries (x*w product, scores broadcast, scores*x)
    tmp_row_pad = 3 * _round_up(S, 8) * _round_up(D, 128) * 4
    per_row_vmem = 2 * x_row_pad + 2 * o_row_pad + tmp_row_pad   # 2x = double buffering
    log_row_bytes = max(S * D * itemsize, 1)                     # actual HBM bytes / row

    # resident operands (w, bias) + Mosaic internal scratch headroom
    w_pad = _round_up(S, sublane) * _round_up(D, 128) * itemsize
    b_pad = _round_up(S, 8) * 128 * 4
    reserve = 2 * (w_pad + b_pad) + (2 << 20)

    vmem_for_tiles = max(per_row_vmem, (vmem_limit * 3) // 4 - reserve)

    # ---- tile size: amortize the ~0.35 us per-grid-step cost, capped by VMEM ----
    target_logical = 8 * 1024 * 1024                             # ~8 MiB of x per pipeline buffer
    tb = min(B,
             max(1, target_logical // log_row_bytes),
             max(1, vmem_for_tiles // per_row_vmem))
    if block_b is not None:
        tb = min(tb, block_b)
    if tb < B:
        # multiple of 8 keeps the (tb, D) output block legal and sublane-dense.
        # NOTE: for pathological S*D (a single padded row > budget/16) this floor can
        # exceed the budget; tiling S/D would be the real fix.
        tb = max(8, (tb // 8) * 8)
    else:
        tb = B

    grid = (pl.cdiv(B, tb),)                                     # ragged last block is masked by Pallas

    return pl.pallas_call(
        _attention_kernel,
        out_shape=jax.ShapeDtypeStruct((B, D), out_dtype),
        grid_spec=pltpu.PrefetchScalarGridSpec(
            num_scalar_prefetch=0,
            grid=grid,
            in_specs=[
                # NOTE: if profiling shows exposed DMA latency after enlarging tiles,
                # add pipeline_mode=pl.Buffered(3) here (needs the raised VMEM limit).
                pl.BlockSpec((tb, S, D), lambda i: (i, 0, 0)),
                pl.BlockSpec((S, D), lambda i: (0, 0)),
                pl.BlockSpec((S, 1), lambda i: (0, 0)),
            ],
            out_specs=pl.BlockSpec((tb, D), lambda i: (i, 0)),
        ),
        compiler_params=pltpu.CompilerParams(
            # batch tiles are independent -> shard across TensorCores on v7x megacore
            dimension_semantics=("parallel",),
            vmem_limit_bytes=int(vmem_limit),
        ),
    )(x, w2d, b2d)


def init_params(key, input_size, max_seq_len):
    # glorot: uniform(-stdv, stdv) with stdv = sqrt(6 / (input_size + 1))
    stdv = math.sqrt(6.0 / (input_size + 1))
    atten_w = jax.random.uniform(
        key, (max_seq_len, input_size, 1),
        minval=-stdv, maxval=stdv, dtype=jnp.float32,
    )
    atten_bias = jnp.zeros((max_seq_len, 1, 1), dtype=jnp.float32)
    return atten_w, atten_bias


def attention_reference(lstm_input, atten_w, atten_bias):
    # pure-JAX reference mirroring the PyTorch forward
    x_t = jnp.transpose(lstm_input, (1, 0, 2))                   # (S, B, D)
    scores = jnp.matmul(x_t, atten_w) + atten_bias               # (S, B, 1)
    scores = jnp.transpose(scores, (1, 0, 2))                    # (B, S, 1)
    atten_weight = jnp.tanh(scores)                              # (B, S, 1)
    ws = jnp.matmul(jnp.transpose(atten_weight, (0, 2, 1)),
                    lstm_input)                                  # (B, 1, D)
    return jnp.squeeze(ws, axis=1)                               # (B, D)


if __name__ == "__main__":
    S, D = 8, 32  # max_seq_len, input_size
    key = jax.random.PRNGKey(0)
    k_w, k_x1, k_x2 = jax.random.split(key, 3)

    atten_w, atten_bias = init_params(k_w, input_size=D, max_seq_len=S)

    # Case 1: small batch, single tile (tb == B).
    B1 = 2
    x1 = jax.random.normal(k_x1, (B1, S, D), dtype=jnp.float32)
    out1 = jax.block_until_ready(attention_forward(x1, atten_w, atten_bias))
    ref1 = attention_reference(x1, atten_w, atten_bias)
    assert out1.shape == (B1, D)
    assert jnp.allclose(out1, ref1, atol=1e-5, rtol=1e-5), "mismatch (case 1)"

    # Case 2: ragged batch with a forced small tile — exercises the multi-step grid
    # with a masked partial last block (no padding / slicing in the wrapper).
    B2 = 20
    x2 = jax.random.normal(k_x2, (B2, S, D), dtype=jnp.float32)
    out2 = jax.block_until_ready(
        attention_forward(x2, atten_w, atten_bias, block_b=8))
    ref2 = attention_reference(x2, atten_w, atten_bias)
    assert out2.shape == (B2, D)
    assert jnp.allclose(out2, ref2, atol=1e-5, rtol=1e-5), "mismatch (case 2)"

    # Case 3: bf16 streaming of x / w with f32 accumulation.  Compare against the
    # reference evaluated on identically-quantized inputs.
    x2_q = x2.astype(jnp.bfloat16).astype(jnp.float32)
    w_q = atten_w.astype(jnp.bfloat16).astype(jnp.float32)
    out3 = jax.block_until_ready(
        attention_forward(x2, atten_w, atten_bias, stream_dtype=jnp.bfloat16))
    ref3 = attention_reference(x2_q, w_q, atten_bias)
    assert out3.shape == (B2, D)
    assert out3.dtype == x2.dtype
    assert jnp.allclose(out3, ref3, atol=5e-4, rtol=5e-4), "mismatch (case 3)"

    print("KERNEL_OK")
</pallas_src>

<mosaic_0001>
module attributes {stable_mosaic.version = 11 : i64} {
  func.func @_attention_kernel(%arg0: i32, %arg1: memref<2x8x32xf32, #tpu.memory_space<vmem>>, %arg2: memref<8x32xf32, #tpu.memory_space<vmem>>, %arg3: memref<8x1xf32, #tpu.memory_space<vmem>>, %arg4: memref<2x32xf32, #tpu.memory_space<vmem>>) attributes {dimension_semantics = [#tpu.dimension_semantics<parallel>], iteration_bounds = array<i64: 1>, scalar_prefetch = 0 : i64, scratch_operands = 0 : i64, tpu.core_type = #tpu.core_type<tc>, window_params = [{transform_indices = @transform_0, window_bounds = array<i64: 2, 8, 32>}, {pipeline_mode = #tpu.pipeline_mode<synchronous>, transform_indices = @transform_1, window_bounds = array<i64: 8, 32>}, {pipeline_mode = #tpu.pipeline_mode<synchronous>, transform_indices = @transform_2, window_bounds = array<i64: 8, 1>}, {transform_indices = @transform_3, window_bounds = array<i64: 2, 32>}]} {
    %c0 = arith.constant 0 : index
    %c0_0 = arith.constant 0 : index
    %c0_1 = arith.constant 0 : index
    %0 = vector.load %arg1[%c0, %c0_0, %c0_1] : memref<2x8x32xf32, #tpu.memory_space<vmem>>, vector<2x8x32xf32>
    %c0_2 = arith.constant 0 : index
    %c0_3 = arith.constant 0 : index
    %1 = vector.load %arg2[%c0_2, %c0_3] : memref<8x32xf32, #tpu.memory_space<vmem>>, vector<8x32xf32>
    %c0_4 = arith.constant 0 : index
    %c0_5 = arith.constant 0 : index
    %2 = vector.load %arg3[%c0_4, %c0_5] : memref<8x1xf32, #tpu.memory_space<vmem>>, vector<8x1xf32>
    %3 = vector.shape_cast %1 : vector<8x32xf32> to vector<1x8x32xf32>
    %4 = vector.broadcast %3 : vector<1x8x32xf32> to vector<2x8x32xf32>
    %5 = arith.mulf %0, %4 : vector<2x8x32xf32>
    %cst = arith.constant dense<0.000000e+00> : vector<2x8xf32>
    %6 = vector.multi_reduction <add>, %5, %cst [2] : vector<2x8x32xf32> to vector<2x8xf32>
    %7 = vector.shape_cast %6 : vector<2x8xf32> to vector<2x8x1xf32>
    %8 = vector.shape_cast %2 : vector<8x1xf32> to vector<1x8x1xf32>
    %9 = vector.broadcast %8 : vector<1x8x1xf32> to vector<2x8x1xf32>
    %10 = arith.addf %7, %9 : vector<2x8x1xf32>
    %11 = math.tanh %10 : vector<2x8x1xf32>
    %12 = vector.broadcast %11 : vector<2x8x1xf32> to vector<2x8x32xf32>
    %13 = arith.mulf %12, %0 : vector<2x8x32xf32>
    %cst_6 = arith.constant dense<0.000000e+00> : vector<2x32xf32>
    %14 = vector.multi_reduction <add>, %13, %cst_6 [1] : vector<2x8x32xf32> to vector<2x32xf32>
    %c0_7 = arith.constant 0 : index
    %c0_8 = arith.constant 0 : index
    %15 = vector.load %arg4[%c0_7, %c0_8] : memref<2x32xf32, #tpu.memory_space<vmem>>, vector<2x32xf32>
    tpu.vector_store %arg4[%c0_7, %c0_8], %14 {strides = array<i32>} : memref<2x32xf32, #tpu.memory_space<vmem>>, vector<2x32xf32>,
    return
  }
  func.func @transform_0(%arg0: i32) -> (i32, i32, i32) {
    %c0_i32 = arith.constant 0 : i32
    %c0_i32_0 = arith.constant 0 : i32
    %c0_i32_1 = arith.constant 0 : i32
    return %arg0, %c0_i32, %c0_i32_0 : i32, i32, i32
  }
  func.func @transform_1(%arg0: i32) -> (i32, i32) {
    %c0_i32 = arith.constant 0 : i32
    %c0_i32_0 = arith.constant 0 : i32
    %c0_i32_1 = arith.constant 0 : i32
    return %c0_i32, %c0_i32_0 : i32, i32
  }
  func.func @transform_2(%arg0: i32) -> (i32, i32) {
    %c0_i32 = arith.constant 0 : i32
    %c0_i32_0 = arith.constant 0 : i32
    %c0_i32_1 = arith.constant 0 : i32
    return %c0_i32, %c0_i32_0 : i32, i32
  }
  func.func @transform_3(%arg0: i32) -> (i32, i32) {
    %c0_i32 = arith.constant 0 : i32
    %c0_i32_0 = arith.constant 0 : i32
    return %arg0, %c0_i32 : i32, i32
  }
}

</mosaic_0001>

<bundles_post_ra>
// kernel: tpu_custom_call.1
= control target key start
LH: loop header
LB: loop body
LE: loop exit
PB: predicated region body
PF: predicated region fallthrough
CT: control target
= control target key end

     0   :  { %8 = vsyncpa [#allocation3], 0  ;;  %s202_s0 = inlined_call_operand.hbm [shape: f32[2,8,32], index: 0, kind: input, shape index: {}]   ;;  %s203_s1 = inlined_call_operand.vmem [shape: f32[8,32], index: 1, kind: input, shape index: {}]   ;;  %s204_s2 = inlined_call_operand.vmem [shape: f32[8,1], index: 2, kind: input, shape index: {}]   ;;  %s205_s3 = inlined_call_operand.hbm [shape: f32[2,32], index: 3, kind: output, shape index: {}]  }
   0x1   :  { %9 = vsyncpa [#allocation4], 0  ;;  %s14_s14 = sshll.u32 %s202_s0, 4  ;;  %s161_s15 = smov [#allocation2]   ;;  %s15_s14 = int_to_ptr.hbm [resolvable:$true] %s14_s14 }
   0x2   :  { %s16_s16 = sshll.u32 %s161_s15, 4  ;;  %s162_s17 = smov 128   ;;  %s17_s16 = int_to_ptr.vmem [resolvable:$true] %s16_s16 }
   0x3   :  { %s163_s18 = smov 8  }
   0x4   :  { %22 = dma.hbm_to_vmem [thread:$0]  %s15_s14, 256, %s17_s16, [#allocation3], %s162_s17, %s162_s17, %s163_s18  }
   0x5   :  { %157 = dma.done.wait [#allocation3], 256  }
   0x6   :  { %158 = vsyncadd [#allocation3], 4294967040  ;;  %v31_v0 = vld [vmem:[#allocation2] sm:$0xff]  ;;  %vm37_vm0 = vcmask 261120   ;;  %v32_v3 = vld [vmem:[#allocation2 + $0x8] sm:$0xff]  ;;  %v164_v7 = vmov 0  }
   0x7   :  { %v33_v1 = vld [vmem:[%s203_s1] sm:$0xff]  ;;  %103 = vset.pattern.permute.xlu1 %v164_v7  ;;  %104 = vset.pattern.permute.xlu0 %v164_v7  ;;  %s165_s1 = smov [#allocation5]   ;;  %s88_s24 = sshll.u32 %s205_s3, 4  ;;  %vm76_vm1 = vcmask 1041409   ;;  %vm79_vm2 = vcmask 254976   ;;  %s89_s24 = int_to_ptr.hbm [resolvable:$true] %s88_s24 }
   0x8   :  { %v35_v2 = vmul.f32 %v33_v1, %v31_v0  ;;  %v36_v5 = vmul.f32 %v33_v1, %v32_v3  ;;  %v34_v8 = vld [vmem:[%s204_s2] sm:$0xff]  ;;  %s86_s2 = sshll.u32 %s165_s1, 4  ;;  %s87_s2 = int_to_ptr.vmem [resolvable:$true] %s86_s2 }
   0xa   :  { %v38_v4 = vsel %vm37_vm0, %v35_v2, 0.0  ;;  %v41_v6 = vsel %vm37_vm0, %v36_v5, 0.0 }
   0xb   :  { %39 = vadd.xlane.f32.xlu0 %v38_v4 }
  0x13   :  { %42 = vadd.xlane.f32.xlu0 %v41_v6 }
  0x7e   :  { %v40_v9 = vpop.xlane.xlu0 %39 }
  0x7f   :  { %v44_v10 = vadd.f32 %v40_v9, %v34_v8 }
  0x81   :  { %105 = vtanh.f32 %v44_v10 }
  0x86   :  { %v43_v11 = vpop.xlane.xlu0 %42 }
  0x87   :  { %v106_v12 = vpop.eup %105  ;;  %v45_v13 = vadd.f32 %v43_v11, %v34_v8 }
  0x88   :  { %50 = vperm.xlu1 %103, %v106_v12  }
  0x89   :  { %107 = vtanh.f32 %v45_v13 }
  0x8f   :  { %v108_v14 = vpop.eup %107 }
  0x90   :  { %55 = vperm.xlu1 %103, %v108_v14  }
  0xfa   :  { %v51_v15 = vpop.permute.xlu1 %50 }
  0xfb   :  { %v58_v16 = vmul.f32 %v51_v15, %v31_v0 }
  0xfd   :  { %v60_v17 = vsel %vm37_vm0, %v58_v16, 0.0 }
  0xfe   :  { %v61_v18 = vrot.slane %v60_v17, 4 }
 0x100   :  { %v62_v19 = vadd.f32 %v61_v18, %v60_v17 }
 0x102   :  { %v56_v20 = vpop.permute.xlu1 %55  ;;  %v63_v22 = vrot.slane %v62_v19, 2 }
 0x103   :  { %v59_v21 = vmul.f32 %v56_v20, %v32_v3 }
 0x104   :  { %v64_v25 = vadd.f32 %v63_v22, %v62_v19 }
 0x105   :  { %v67_v23 = vsel %vm37_vm0, %v59_v21, 0.0 }
 0x106   :  { %v68_v24 = vrot.slane %v67_v23, 4  ;;  %v65_v28 = vrot.slane %v64_v25, 1 }
 0x108   :  { %v69_v26 = vadd.f32 %v68_v24, %v67_v23  ;;  %v66_v31 = vadd.f32 %v65_v28, %v64_v25 }
 0x10a   :  { %v70_v27 = vrot.slane %v69_v26, 2 }
 0x10c   :  { %v71_v29 = vadd.f32 %v70_v27, %v69_v26 }
 0x10e   :  { %v72_v30 = vrot.slane %v71_v29, 1 }
 0x110   :  { %v73_v32 = vadd.f32 %v72_v30, %v71_v29 }
 0x112   :  { %v77_v33 = vsel %vm76_vm1, %v73_v32, %v66_v31 }
 0x113   :  { %80 = vst.msk [vmem:[#allocation5] sm:$0x3] %vm79_vm2, %v77_v33 }
 0x114   :  { %91 = dma.vmem_to_hbm [thread:$0]  %s87_s2, 32, %s89_s24, [#allocation4]  }
 0x115   :  { %159 = dma.done.wait [#allocation4], 32  }
 0x116   :  { %160 = vsyncadd [#allocation4], 4294967264 }
 0x117   :  { %96 = vsyncpa [#allocation3], 1 }
 0x118   :  { %97 = vsyncpa [#allocation4], 1 }

</bundles_post_ra>
